<compile_context>
chip_gen: v5e
topology: v5e:2x2
jax: 0.10.0
libtpu: 0.0.40
codegen_flags: <defaults>
</compile_context>

<pallas_src>
import jax
import jax.numpy as jnp
from jax.experimental import pallas as pl
from jax.experimental.pallas import tpu as pltpu


def _mul_conv1x1_kernel(w_ref, s_ref, x_ref, o_ref):
    # w_ref: (C_out, C_in)   weight (shared across grid)
    # s_ref: (1, C_in)       per-input-channel scale (shared across grid)
    # x_ref: (C_in, rb)      channel-major activation block (batch dim squeezed)
    # o_ref: (C_out, rb)     output block (lane-dense: rb is a multiple of 128
    #                        or the full rows extent)
    # Fold the scale into the tiny weight instead of the large activation:
    #   (x * s) @ w.T  ==  (w * diag(s)) @ x
    w_scaled = w_ref[...] * s_ref[...]                       # (C_out, C_in)
    o_ref[...] = jnp.dot(
        w_scaled, x_ref[...], preferred_element_type=jnp.float32
    ).astype(o_ref.dtype)


def _tensorcores_per_chip():
    """Best-effort detection: v7x has 2 TensorCores per chip, older parts 1."""
    try:
        kind = jax.devices()[0].device_kind.lower()
    except Exception:
        return 1
    return 2 if ("v7" in kind or "7x" in kind) else 1


def mul_conv1x1(x_nchw, scale_nc11, weight_oihw, row_block=None):
    """Computes conv2d_1x1(x * scale), bias=False, matching the PyTorch module.

    x_nchw:      (N, C_in, H, W)
    scale_nc11:  (1, C_in, 1, 1)   NOTE: the weight-side scale fold assumes the
                                   scale's batch dim is 1 (as in the module).
    weight_oihw: (C_out, C_in, 1, 1)
    returns:     (N, C_out, H, W)
    """
    N, C_in, H, W = x_nchw.shape
    C_out = weight_oihw.shape[0]
    rows = H * W
    assert scale_nc11.shape == (1, C_in, 1, 1), (
        "scale fold into the weight requires a batch-1 scale")

    # Channel-major reshapes only -- no NCHW<->NHWC transposes.
    x_cm = x_nchw.reshape(N, C_in, rows)          # (N, C_in, rows)
    s_row = scale_nc11.reshape(1, C_in)           # (1, C_in)
    w_mat = weight_oihw.reshape(C_out, C_in)      # (C_out, C_in)

    # Row tiling: only split the rows axis when there is a second TensorCore
    # to feed (v7x) and the batch axis does not already provide parallel work.
    # Row blocks must be multiples of 128 (or the full extent) per the (8,128)
    # BlockSpec rule; 512 gives a 512/272 split of rows=784.
    if row_block is None:
        if _tensorcores_per_chip() >= 2 and N == 1 and rows > 512:
            row_block = 512
        else:
            row_block = rows
    assert row_block == rows or row_block % 128 == 0
    n_row_blocks = pl.cdiv(rows, row_block)

    itemsize = jnp.dtype(x_nchw.dtype).itemsize
    flops = 2 * N * rows * C_in * C_out
    bytes_accessed = (
        x_cm.size + s_row.size + w_mat.size + N * C_out * rows
    ) * itemsize

    out_cm = pl.pallas_call(
        _mul_conv1x1_kernel,
        out_shape=jax.ShapeDtypeStruct((N, C_out, rows), x_nchw.dtype),
        grid=(N, n_row_blocks),
        in_specs=[
            pl.BlockSpec((C_out, C_in), lambda n, r: (0, 0)),        # weight (shared)
            pl.BlockSpec((1, C_in), lambda n, r: (0, 0)),            # scale  (shared)
            pl.BlockSpec((None, C_in, row_block),                    # activations
                         lambda n, r: (n, 0, r)),
        ],
        out_specs=pl.BlockSpec((None, C_out, row_block), lambda n, r: (n, 0, r)),
        compiler_params=pltpu.CompilerParams(
            dimension_semantics=("parallel", "parallel"),
        ),
        cost_estimate=pl.CostEstimate(
            flops=flops, transcendentals=0, bytes_accessed=bytes_accessed
        ),
    )(w_mat, s_row, x_cm)

    # Channel-major result reshapes directly to NCHW (no transpose).
    return out_cm.reshape(N, C_out, H, W)


if __name__ == "__main__":
    key = jax.random.PRNGKey(0)
    k1, k2, k3 = jax.random.split(key, 3)

    # Shapes from the module: x48 (1,120,28,28), x53 (1,120,1,1),
    # Conv2d(120 -> 40, kernel 1x1, bias=False)
    N, C_in, H, W, C_out = 1, 120, 28, 28, 40

    x48 = jax.random.normal(k1, (N, C_in, H, W), dtype=jnp.float32)
    x53 = jax.random.normal(k2, (1, C_in, 1, 1), dtype=jnp.float32)
    bound = 1.0 / (C_in ** 0.5)
    w = jax.random.uniform(
        k3, (C_out, C_in, 1, 1), dtype=jnp.float32, minval=-bound, maxval=bound
    )

    out = mul_conv1x1(x48, x53, w)
    jax.block_until_ready(out)

    # Reference in plain JAX (same math as the PyTorch module).
    ref = jnp.einsum("nchw,oc->nohw", x48 * x53, w.reshape(C_out, C_in))
    assert out.shape == (N, C_out, H, W)
    assert jnp.allclose(out, ref, atol=1e-4, rtol=1e-4)

    print("KERNEL_OK")
</pallas_src>

<mosaic_0001>
module attributes {stable_mosaic.version = 11 : i64} {
  func.func @_mul_conv1x1_kernel(%arg0: i32, %arg1: i32, %arg2: memref<40x120xf32, #tpu.memory_space<vmem>>, %arg3: memref<1x120xf32, #tpu.memory_space<vmem>>, %arg4: memref<1x120x784xf32, #tpu.memory_space<vmem>>, %arg5: memref<1x40x784xf32, #tpu.memory_space<vmem>>) attributes {dimension_semantics = [#tpu.dimension_semantics<parallel>, #tpu.dimension_semantics<parallel>], iteration_bounds = array<i64: 1, 1>, scalar_prefetch = 0 : i64, scratch_operands = 0 : i64, tpu.core_type = #tpu.core_type<tc>, window_params = [{pipeline_mode = #tpu.pipeline_mode<synchronous>, transform_indices = @transform_0, window_bounds = array<i64: 40, 120>}, {pipeline_mode = #tpu.pipeline_mode<synchronous>, transform_indices = @transform_1, window_bounds = array<i64: 1, 120>}, {transform_indices = @transform_2, window_bounds = array<i64: 1, 120, 784>}, {transform_indices = @transform_3, window_bounds = array<i64: 1, 40, 784>}]} {
    %c0 = arith.constant 0 : index
    %c0_0 = arith.constant 0 : index
    %0 = vector.load %arg2[%c0, %c0_0] : memref<40x120xf32, #tpu.memory_space<vmem>>, vector<40x120xf32>
    %c0_1 = arith.constant 0 : index
    %c0_2 = arith.constant 0 : index
    %1 = vector.load %arg3[%c0_1, %c0_2] : memref<1x120xf32, #tpu.memory_space<vmem>>, vector<1x120xf32>
    %2 = vector.broadcast %1 : vector<1x120xf32> to vector<40x120xf32>
    %3 = arith.mulf %0, %2 : vector<40x120xf32>
    %c0_3 = arith.constant 0 : index
    %c0_4 = arith.constant 0 : index
    %c0_5 = arith.constant 0 : index
    %4 = vector.load %arg4[%c0_3, %c0_4, %c0_5] : memref<1x120x784xf32, #tpu.memory_space<vmem>>, vector<1x120x784xf32>
    %5 = vector.shape_cast %4 : vector<1x120x784xf32> to vector<120x784xf32>
    %cst = arith.constant dense<0.000000e+00> : vector<40x784xf32>
    %6 = tpu.matmul %3, %5, %cst {dimension_numbers = #tpu.dot_dimension_numbers<[1], [0], [0], [1], [0, 0, 1, 1], [], []>} : vector<40x120xf32>, vector<120x784xf32>, vector<40x784xf32> -> vector<40x784xf32>
    %c0_6 = arith.constant 0 : index
    %c0_7 = arith.constant 0 : index
    %c0_8 = arith.constant 0 : index
    %7 = vector.load %arg5[%c0_6, %c0_7, %c0_8] : memref<1x40x784xf32, #tpu.memory_space<vmem>>, vector<1x40x784xf32>
    %8 = vector.shape_cast %7 : vector<1x40x784xf32> to vector<40x784xf32>
    %9 = vector.shape_cast %6 : vector<40x784xf32> to vector<1x40x784xf32>
    tpu.vector_store %arg5[%c0_6, %c0_7, %c0_8], %9 {strides = array<i32>} : memref<1x40x784xf32, #tpu.memory_space<vmem>>, vector<1x40x784xf32>,
    return
  }
  func.func @transform_0(%arg0: i32, %arg1: i32) -> (i32, i32) {
    %c0_i32 = arith.constant 0 : i32
    %c0_i32_0 = arith.constant 0 : i32
    %c0_i32_1 = arith.constant 0 : i32
    return %c0_i32, %c0_i32_0 : i32, i32
  }
  func.func @transform_1(%arg0: i32, %arg1: i32) -> (i32, i32) {
    %c0_i32 = arith.constant 0 : i32
    %c0_i32_0 = arith.constant 0 : i32
    %c0_i32_1 = arith.constant 0 : i32
    return %c0_i32, %c0_i32_0 : i32, i32
  }
  func.func @transform_2(%arg0: i32, %arg1: i32) -> (i32, i32, i32) {
    %c0_i32 = arith.constant 0 : i32
    %c0_i32_0 = arith.constant 0 : i32
    return %arg0, %c0_i32, %arg1 : i32, i32, i32
  }
  func.func @transform_3(%arg0: i32, %arg1: i32) -> (i32, i32, i32) {
    %c0_i32 = arith.constant 0 : i32
    %c0_i32_0 = arith.constant 0 : i32
    return %arg0, %c0_i32, %arg1 : i32, i32, i32
  }
}

</mosaic_0001>

<bundles_post_ra>
// kernel: tpu_custom_call.1
= control target key start
LH: loop header
LB: loop body
LE: loop exit
PB: predicated region body
PF: predicated region fallthrough
CT: control target
= control target key end

     0   :  { %vm134_vm0 = vcmask 982016   ;;  %s959_s0 = inlined_call_operand.vmem [shape: f32[40,120], index: 0, kind: input, shape index: {}]   ;;  %s960_s1 = inlined_call_operand.vmem [shape: f32[1,120], index: 1, kind: input, shape index: {}]   ;;  %s961_s2 = inlined_call_operand.vmem [shape: f32[1,120,784], index: 2, kind: input, shape index: {}]   ;;  %s962_s3 = inlined_call_operand.hbm [shape: f32[1,40,784], index: 3, kind: output, shape index: {}]  }
   0x1   :  { %v129_v0 = vld [vmem:[%s961_s2 + $0x320] sm:$0xff]  ;;  %v122_v1 = vld [vmem:[%s961_s2 + $0x2e8] sm:$0xff]  ;;  %v128_v2 = vld [vmem:[%s961_s2 + $0x318] sm:$0xff] }
   0x2   :  { %215 = vmatpush.msra.mxu2 %v129_v0  ;;  %v121_v3 = vld [vmem:[%s961_s2 + $0x2e0] sm:$0xff]  ;;  %v115_v4 = vld [vmem:[%s961_s2 + $0x2b0] sm:$0xff]  ;;  %183 = vmatpush.msra.mxu1 %v128_v2  ;;  %v114_v5 = vld [vmem:[%s961_s2 + $0x2a8] sm:$0xff] }
   0x3   :  { %v127_v6 = vld [vmem:[%s961_s2 + $0x310] sm:$0xff]  ;;  %v108_v7 = vld [vmem:[%s961_s2 + $0x278] sm:$0xff]  ;;  %v113_v10 = vld [vmem:[%s961_s2 + $0x2a0] sm:$0xff] }
   0x4   :  { %216 = vmatpush.msra.mxu2 %v122_v1  ;;  %184 = vmatpush.msra.mxu1 %v121_v3  ;;  %v120_v8 = vld [vmem:[%s961_s2 + $0x2d8] sm:$0xff]  ;;  %v107_v9 = vld [vmem:[%s961_s2 + $0x270] sm:$0xff]  ;;  %v101_v11 = vld [vmem:[%s961_s2 + $0x240] sm:$0xff] }
   0x5   :  { %463 = vmatpush.msra.mxu3 %v127_v6  ;;  %151 = vmatpush.msra.mxu0 %v127_v6  ;;  %v100_v12 = vld [vmem:[%s961_s2 + $0x238] sm:$0xff]  ;;  %v106_v13 = vld [vmem:[%s961_s2 + $0x268] sm:$0xff]  ;;  %v93_v15 = vld [vmem:[%s961_s2 + $0x200] sm:$0xff] }
   0x6   :  { %217 = vmatpush.msra.mxu2 %v115_v4  ;;  %185 = vmatpush.msra.mxu1 %v114_v5  ;;  %v94_v14 = vld [vmem:[%s961_s2 + $0x208] sm:$0xff]  ;;  %v99_v16 = vld [vmem:[%s961_s2 + $0x230] sm:$0xff]  ;;  %v92_v19 = vld [vmem:[%s961_s2 + $0x1f8] sm:$0xff] }
   0x7   :  { %464 = vmatpush.msra.mxu3 %v120_v8  ;;  %152 = vmatpush.msra.mxu0 %v120_v8  ;;  %v87_v17 = vld [vmem:[%s961_s2 + $0x1d0] sm:$0xff]  ;;  %v86_v18 = vld [vmem:[%s961_s2 + $0x1c8] sm:$0xff]  ;;  %v80_v20 = vld [vmem:[%s961_s2 + $0x198] sm:$0xff] }
   0x8   :  { %218 = vmatpush.msra.mxu2 %v108_v7  ;;  %186 = vmatpush.msra.mxu1 %v107_v9  ;;  %v79_v21 = vld [vmem:[%s961_s2 + $0x190] sm:$0xff]  ;;  %v85_v22 = vld [vmem:[%s961_s2 + $0x1c0] sm:$0xff]  ;;  %v72_v24 = vld [vmem:[%s961_s2 + $0x158] sm:$0xff] }
   0x9   :  { %465 = vmatpush.msra.mxu3 %v113_v10  ;;  %153 = vmatpush.msra.mxu0 %v113_v10  ;;  %v73_v23 = vld [vmem:[%s961_s2 + $0x160] sm:$0xff]  ;;  %v78_v25 = vld [vmem:[%s961_s2 + $0x188] sm:$0xff]  ;;  %v71_v28 = vld [vmem:[%s961_s2 + $0x150] sm:$0xff] }
   0xa   :  { %219 = vmatpush.msra.mxu2 %v101_v11  ;;  %187 = vmatpush.msra.mxu1 %v100_v12  ;;  %v66_v26 = vld [vmem:[%s961_s2 + $0x128] sm:$0xff]  ;;  %v65_v27 = vld [vmem:[%s961_s2 + $0x120] sm:$0xff]  ;;  %v59_v29 = vld [vmem:[%s961_s2 + $0xf0] sm:$0xff] }
   0xb   :  { %466 = vmatpush.msra.mxu3 %v106_v13  ;;  %154 = vmatpush.msra.mxu0 %v106_v13  ;;  %v58_v30 = vld [vmem:[%s961_s2 + $0xe8] sm:$0xff]  ;;  %v64_v31 = vld [vmem:[%s961_s2 + $0x118] sm:$0xff]  ;;  %v51_v33 = vld [vmem:[%s961_s2 + $0xb0] sm:$0xff] }
   0xc   :  { %220 = vmatpush.msra.mxu2 %v94_v14  ;;  %188 = vmatpush.msra.mxu1 %v93_v15  ;;  %v52_v32 = vld [vmem:[%s961_s2 + $0xb8] sm:$0xff]  ;;  %v57_v34 = vld [vmem:[%s961_s2 + $0xe0] sm:$0xff]  ;;  %v50_v39 = vld [vmem:[%s961_s2 + $0xa8] sm:$0xff] }
   0xd   :  { %467 = vmatpush.msra.mxu3 %v99_v16  ;;  %155 = vmatpush.msra.mxu0 %v99_v16  ;;  %v45_v35 = vld [vmem:[%s961_s2 + $0x80] sm:$0xff]  ;;  %v44_v38 = vld [vmem:[%s961_s2 + $0x78] sm:$0xff]  ;;  %v38_v40 = vld [vmem:[%s961_s2 + $0x48] sm:$0xff] }
   0xe   :  { %221 = vmatpush.msra.mxu2 %v87_v17  ;;  %189 = vmatpush.msra.mxu1 %v86_v18  ;;  %v642_v36 = vld [vmem:[%s960_s1] ss:$0 sm:$0xff]  ;;  %v43_v42 = vld [vmem:[%s961_s2 + $0x70] sm:$0xff]  ;;  %v30_v45 = vld [vmem:[%s961_s2 + $0x8] sm:$0xff] }
   0xf   :  { %468 = vmatpush.msra.mxu3 %v92_v19  ;;  %156 = vmatpush.msra.mxu0 %v92_v19  ;;  %v15_v37 = vld [vmem:[%s959_s0] sm:$0xff]  ;;  %v31_v43 = vld [vmem:[%s961_s2 + $0x10] sm:$0xff]  ;;  %v132_v47 = vld [vmem:[%s961_s2 + $0x338] sm:$0xff] }
  0x10   :  { %222 = vmatpush.msra.mxu2 %v80_v20  ;;  %190 = vmatpush.msra.mxu1 %v79_v21  ;;  %v37_v41 = vld [vmem:[%s961_s2 + $0x40] sm:$0xff]  ;;  %v666_v44 = vmul.f32 %v642_v36, %v15_v37  ;;  %v36_v48 = vld [vmem:[%s961_s2 + $0x38] sm:$0xff]  ;;  %v126_v49 = vld [vmem:[%s961_s2 + $0x308] sm:$0xff] }
  0x11   :  { %469 = vmatpush.msra.mxu3 %v85_v22  ;;  %157 = vmatpush.msra.mxu0 %v85_v22  ;;  %v133_v46 = vld [vmem:[%s961_s2 + $0x340] sm:$0xff]  ;;  %v16_v50 = vld [vmem:[%s959_s0 + $0x8] sm:$0xff]  ;;  %v119_v53 = vld [vmem:[%s961_s2 + $0x2d0] sm:$0xff] }
  0x12   :  { %223 = vmatpush.msra.mxu2 %v73_v23  ;;  %191 = vmatpush.msra.mxu1 %v72_v24  ;;  %v125_v51 = vld [vmem:[%s961_s2 + $0x300] sm:$0xff]  ;;  %v130_v54 = vld [vmem:[%s961_s2 + $0x328] sm:$0xff]  ;;  %v706_v56 = vmul.f32 %v642_v36, %v16_v50  ;;  %v112_v57 = vld [vmem:[%s961_s2 + $0x298] sm:$0xff] }
  0x13   :  { %470 = vmatpush.msra.mxu3 %v78_v25  ;;  %158 = vmatpush.msra.mxu0 %v78_v25  ;;  %v29_v52 = vld [vmem:[%s961_s2] sm:$0xff]  ;;  %v118_v55 = vld [vmem:[%s961_s2 + $0x2c8] sm:$0xff]  ;;  %v123_v58 = vld [vmem:[%s961_s2 + $0x2f0] sm:$0xff] }
  0x14   :  { %224 = vmatpush.msra.mxu2 %v66_v26  ;;  %192 = vmatpush.msra.mxu1 %v65_v27 }
  0x15   :  { %471 = vmatpush.msra.mxu3 %v71_v28  ;;  %159 = vmatpush.msra.mxu0 %v71_v28 }
  0x16   :  { %225 = vmatpush.msra.mxu2 %v59_v29  ;;  %193 = vmatpush.msra.mxu1 %v58_v30 }
  0x17   :  { %472 = vmatpush.msra.mxu3 %v64_v31  ;;  %160 = vmatpush.msra.mxu0 %v64_v31 }
  0x18   :  { %226 = vmatpush.msra.mxu2 %v52_v32  ;;  %194 = vmatpush.msra.mxu1 %v51_v33 }
  0x19   :  { %473 = vmatpush.msra.mxu3 %v57_v34  ;;  %161 = vmatpush.msra.mxu0 %v57_v34 }
  0x1a   :  { %227 = vmatpush.msra.mxu2 %v45_v35  ;;  %195 = vmatpush.msra.mxu1 %v44_v38 }
  0x1b   :  { %474 = vmatpush.msra.mxu3 %v50_v39  ;;  %162 = vmatpush.msra.mxu0 %v50_v39 }
  0x1c   :  { %228 = vmatpush.msra.mxu2 %v38_v40  ;;  %196 = vmatpush.msra.mxu1 %v37_v41 }
  0x1d   :  { %475 = vmatpush.msra.mxu3 %v43_v42  ;;  %163 = vmatpush.msra.mxu0 %v43_v42 }
  0x1e   :  { %229 = vmatpush.msra.mxu2 %v31_v43  ;;  %197 = vmatpush.msra.mxu1 %v30_v45 }
  0x1f   :  { %438 = vmatmul.msk.f32.vlgmr.msra.gmra.mxu2 %vm134_vm0, %v666_v44  ;;  %433 = vmatmul.msk.f32.vlgmr.msra.gmra.mxu1 %vm134_vm0, %v666_v44 }
  0x20   :  { %343 = vmatpush.msrb.mxu2 %v133_v46  ;;  %311 = vmatpush.msrb.mxu1 %v132_v47 }
  0x21   :  { %476 = vmatpush.msra.mxu3 %v36_v48  ;;  %164 = vmatpush.msra.mxu0 %v36_v48 }
  0x22   :  { %344 = vmatpush.msrb.mxu2 %v126_v49  ;;  %312 = vmatpush.msrb.mxu1 %v125_v51 }
  0x23   :  { %477 = vmatpush.msra.mxu3 %v29_v52 }
  0x24   :  { %345 = vmatpush.msrb.mxu2 %v119_v53 }
  0x25   :  { %247 = vmatpush.msrb.mxu3 %v130_v54 }
  0x26   :  { %8 = vsyncpa [#allocation3], 0  ;;  %v105_v59 = vld [vmem:[%s961_s2 + $0x260] sm:$0xff]  ;;  %313 = vmatpush.msrb.mxu1 %v118_v55  ;;  %165 = vmatpush.msra.mxu0 %v29_v52  ;;  %v131_v60 = vld [vmem:[%s961_s2 + $0x330] sm:$0xff]  ;;  %vm380_vm1 = vcmask 130048   ;;  %s416_s13 = sshll.u32 %s962_s3, 4  ;;  %s417_s13 = int_to_ptr.hbm [resolvable:$true] %s416_s13 }
  0x27   :  { %346 = vmatpush.msrb.mxu2 %v112_v57  ;;  %248 = vmatpush.msrb.mxu3 %v123_v58  ;;  %v111_v61 = vld [vmem:[%s961_s2 + $0x290] sm:$0xff]  ;;  %v98_v62 = vld [vmem:[%s961_s2 + $0x228] sm:$0xff]  ;;  %v116_v63 = vld [vmem:[%s961_s2 + $0x2b8] sm:$0xff]  ;;  %s509_s14 = smov 896   ;;  %s510_s15 = smov 56  }
  0x28   :  { %439 = vmatmul.msk.f32.gmra.mxu2 %vm134_vm0, %v706_v56  ;;  %428 = vmatmul.msk.f32.vlgmr.msra.gmra.mxu0 %vm134_vm0, %v666_v44  ;;  %v17_v0 = vld [vmem:[%s959_s0 + $0x10] sm:$0xff]  ;;  %v124_v1 = vld [vmem:[%s961_s2 + $0x2f8] sm:$0xff]  ;;  %v109_v4 = vld [vmem:[%s961_s2 + $0x280] sm:$0xff] }
  0x29   :  { %347 = vmatpush.msrb.mxu2 %v105_v59  ;;  %434 = vmatmul.msk.f32.gmra.mxu1 %vm134_vm0, %v706_v56  ;;  %v104_v2 = vld [vmem:[%s961_s2 + $0x258] sm:$0xff]  ;;  %v91_v3 = vld [vmem:[%s961_s2 + $0x1f0] sm:$0xff]  ;;  %v117_v5 = vld [vmem:[%s961_s2 + $0x2c0] sm:$0xff]  ;;  %v757_v7 = vmul.f32 %v642_v36, %v17_v0 }
  0x2a   :  { %279 = vmatpush.msrb.mxu0 %v131_v60  ;;  %314 = vmatpush.msrb.mxu1 %v111_v61  ;;  %v97_v6 = vld [vmem:[%s961_s2 + $0x220] sm:$0xff]  ;;  %v102_v8 = vld [vmem:[%s961_s2 + $0x248] sm:$0xff]  ;;  %v84_v9 = vld [vmem:[%s961_s2 + $0x1b8] sm:$0xff] }
  0x2b   :  { %348 = vmatpush.msrb.mxu2 %v98_v62  ;;  %249 = vmatpush.msrb.mxu3 %v116_v63  ;;  %v110_v10 = vld [vmem:[%s961_s2 + $0x288] sm:$0xff]  ;;  %v95_v11 = vld [vmem:[%s961_s2 + $0x210] sm:$0xff]  ;;  %v77_v12 = vld [vmem:[%s961_s2 + $0x180] sm:$0xff] }
  0x2c   :  { %280 = vmatpush.msrb.mxu0 %v124_v1  ;;  %315 = vmatpush.msrb.mxu1 %v104_v2  ;;  %v90_v13 = vld [vmem:[%s961_s2 + $0x1e8] sm:$0xff]  ;;  %v88_v14 = vld [vmem:[%s961_s2 + $0x1d8] sm:$0xff]  ;;  %v103_v15 = vld [vmem:[%s961_s2 + $0x250] sm:$0xff] }
  0x2d   :  { %349 = vmatpush.msrb.mxu2 %v91_v3  ;;  %250 = vmatpush.msrb.mxu3 %v109_v4  ;;  %v18_v16 = vld [vmem:[%s959_s0 + $0x18] sm:$0xff]  ;;  %v70_v17 = vld [vmem:[%s961_s2 + $0x148] sm:$0xff]  ;;  %v81_v18 = vld [vmem:[%s961_s2 + $0x1a0] sm:$0xff] }
  0x2e   :  { %281 = vmatpush.msrb.mxu0 %v117_v5  ;;  %316 = vmatpush.msrb.mxu1 %v97_v6  ;;  %v83_v19 = vld [vmem:[%s961_s2 + $0x1b0] sm:$0xff]  ;;  %v96_v20 = vld [vmem:[%s961_s2 + $0x218] sm:$0xff]  ;;  %v808_v22 = vmul.f32 %v642_v36, %v18_v16  ;;  %v74_v23 = vld [vmem:[%s961_s2 + $0x168] sm:$0xff] }
  0x2f   :  { %251 = vmatpush.msrb.mxu3 %v102_v8  ;;  %350 = vmatpush.msrb.mxu2 %v84_v9  ;;  %v63_v21 = vld [vmem:[%s961_s2 + $0x110] sm:$0xff]  ;;  %v76_v24 = vld [vmem:[%s961_s2 + $0x178] sm:$0xff]  ;;  %v89_v25 = vld [vmem:[%s961_s2 + $0x1e0] sm:$0xff] }
  0x30   :  { %440 = vmatmul.msk.f32.gmra.mxu2 %vm134_vm0, %v757_v7  ;;  %282 = vmatpush.msrb.mxu0 %v110_v10  ;;  %v67_v26 = vld [vmem:[%s961_s2 + $0x130] sm:$0xff]  ;;  %v19_v27 = vld [vmem:[%s959_s0 + $0x20] sm:$0xff]  ;;  %v82_v28 = vld [vmem:[%s961_s2 + $0x1a8] sm:$0xff] }
  0x31   :  { %252 = vmatpush.msrb.mxu3 %v95_v11  ;;  %429 = vmatmul.msk.f32.gmra.mxu0 %vm134_vm0, %v706_v56  ;;  %v69_v29 = vld [vmem:[%s961_s2 + $0x140] sm:$0xff]  ;;  %v56_v30 = vld [vmem:[%s961_s2 + $0xd8] sm:$0xff]  ;;  %v842_v32 = vmul.f32 %v642_v36, %v19_v27  ;;  %v75_v33 = vld [vmem:[%s961_s2 + $0x170] sm:$0xff] }
  0x32   :  { %435 = vmatmul.msk.f32.gmra.mxu1 %vm134_vm0, %v757_v7  ;;  %351 = vmatpush.msrb.mxu2 %v77_v12  ;;  %v60_v31 = vld [vmem:[%s961_s2 + $0xf8] sm:$0xff]  ;;  %v49_v34 = vld [vmem:[%s961_s2 + $0xa0] sm:$0xff]  ;;  %v62_v36 = vld [vmem:[%s961_s2 + $0x108] sm:$0xff] }
  0x33   :  { %317 = vmatpush.msrb.mxu1 %v90_v13  ;;  %253 = vmatpush.msrb.mxu3 %v88_v14  ;;  %v53_v35 = vld [vmem:[%s961_s2 + $0xc0] sm:$0xff]  ;;  %v68_v37 = vld [vmem:[%s961_s2 + $0x138] sm:$0xff]  ;;  %v42_v38 = vld [vmem:[%s961_s2 + $0x68] sm:$0xff] }
  0x34   :  { %283 = vmatpush.msrb.mxu0 %v103_v15  ;;  %352 = vmatpush.msrb.mxu2 %v70_v17  ;;  %v46_v39 = vld [vmem:[%s961_s2 + $0x88] sm:$0xff]  ;;  %v61_v40 = vld [vmem:[%s961_s2 + $0x100] sm:$0xff]  ;;  %v55_v41 = vld [vmem:[%s961_s2 + $0xd0] sm:$0xff] }
  0x35   :  { %254 = vmatpush.msrb.mxu3 %v81_v18  ;;  %318 = vmatpush.msrb.mxu1 %v83_v19  ;;  %v39_v42 = vld [vmem:[%s961_s2 + $0x50] sm:$0xff]  ;;  %v54_v43 = vld [vmem:[%s961_s2 + $0xc8] sm:$0xff]  ;;  %v48_v45 = vld [vmem:[%s961_s2 + $0x98] sm:$0xff] }
  0x36   :  { %284 = vmatpush.msrb.mxu0 %v96_v20  ;;  %353 = vmatpush.msrb.mxu2 %v63_v21  ;;  %v35_v46 = vld [vmem:[%s961_s2 + $0x30] sm:$0xff]  ;;  %v32_v47 = vld [vmem:[%s961_s2 + $0x18] sm:$0xff]  ;;  %v41_v49 = vld [vmem:[%s961_s2 + $0x60] sm:$0xff] }
  0x37   :  { %255 = vmatpush.msrb.mxu3 %v74_v23  ;;  %319 = vmatpush.msrb.mxu1 %v76_v24  ;;  %v47_v48 = vld [vmem:[%s961_s2 + $0x90] sm:$0xff]  ;;  %v40_v50 = vld [vmem:[%s961_s2 + $0x58] sm:$0xff]  ;;  %v34_v51 = vld [vmem:[%s961_s2 + $0x28] sm:$0xff] }
  0x38   :  { %441 = vmatmul.msk.f32.gmra.mxu2 %vm134_vm0, %v808_v22  ;;  %285 = vmatpush.msrb.mxu0 %v89_v25  ;;  %v33_v52 = vld [vmem:[%s961_s2 + $0x20] sm:$0xff]  ;;  %s508_s2 = smov [#allocation2]  }
  0x39   :  { %256 = vmatpush.msrb.mxu3 %v67_v26  ;;  %430 = vmatmul.msk.f32.gmra.mxu0 %vm134_vm0, %v757_v7  ;;  %s414_s11 = sshll.u32 %s508_s2, 4  ;;  %s415_s11 = int_to_ptr.vmem [resolvable:$true] %s414_s11 }
  0x3a   :  { %286 = vmatpush.msrb.mxu0 %v82_v28  ;;  %436 = vmatmul.msk.f32.gmra.mxu1 %vm134_vm0, %v808_v22 }
  0x3b   :  { %320 = vmatpush.msrb.mxu1 %v69_v29  ;;  %354 = vmatpush.msrb.mxu2 %v56_v30 }
  0x3c   :  { %257 = vmatpush.msrb.mxu3 %v60_v31  ;;  %287 = vmatpush.msrb.mxu0 %v75_v33 }
  0x3d   :  { %432 = vmatmul.msk.f32.vlgmr.msra.gmra.mxu3 %vm134_vm0, %v842_v32  ;;  %355 = vmatpush.msrb.mxu2 %v49_v34 }
  0x3e   :  { %258 = vmatpush.msrb.mxu3 %v53_v35  ;;  %321 = vmatpush.msrb.mxu1 %v62_v36 }
  0x3f   :  { %288 = vmatpush.msrb.mxu0 %v68_v37  ;;  %356 = vmatpush.msrb.mxu2 %v42_v38 }
  0x40   :  { %442 = vmatmul.msk.f32.gmra.mxu2 %vm134_vm0, %v842_v32  ;;  %259 = vmatpush.msrb.mxu3 %v46_v39 }
  0x41   :  { %289 = vmatpush.msrb.mxu0 %v61_v40  ;;  %322 = vmatpush.msrb.mxu1 %v55_v41 }
  0x42   :  { %260 = vmatpush.msrb.mxu3 %v39_v42  ;;  %431 = vmatmul.msk.f32.gmra.mxu0 %vm134_vm0, %v808_v22 }
  0x43   :  { %437 = vmatmul.msk.f32.gmra.mxu1 %vm134_vm0, %v842_v32  ;;  %290 = vmatpush.msrb.mxu0 %v54_v43 }
  0x44   :  { %323 = vmatpush.msrb.mxu1 %v48_v45  ;;  %357 = vmatpush.msrb.mxu2 %v35_v46 }
  0x45   :  { %261 = vmatpush.msrb.mxu3 %v32_v47  ;;  %291 = vmatpush.msrb.mxu0 %v47_v48 }
  0x46   :  { %443 = vmatmul.msk.f32.vlgmr.msrb.gmra.mxu3 %vm134_vm0, %v666_v44  ;;  %324 = vmatpush.msrb.mxu1 %v41_v49 }
  0x47   :  { %292 = vmatpush.msrb.mxu0 %v40_v50 }
  0x48   :  { %458 = vmatmul.msk.f32.vlgmr.msrb.gmra.mxu2 %vm134_vm0, %v666_v44  ;;  %325 = vmatpush.msrb.mxu1 %v34_v51 }
  0x49   :  { %293 = vmatpush.msrb.mxu0 %v33_v52 }
  0x4a   :  { %448 = vmatmul.msk.f32.vlgmr.msrb.gmra.mxu0 %vm134_vm0, %v666_v44 }
  0x4b   :  { %453 = vmatmul.msk.f32.vlgmr.msrb.gmra.mxu1 %vm134_vm0, %v666_v44 }
  0x4e   :  { %444 = vmatmul.msk.f32.gmra.mxu3 %vm134_vm0, %v706_v56 }
  0x50   :  { %459 = vmatmul.msk.f32.gmra.mxu2 %vm134_vm0, %v706_v56 }
  0x52   :  { %449 = vmatmul.msk.f32.gmra.mxu0 %vm134_vm0, %v706_v56 }
  0x53   :  { %454 = vmatmul.msk.f32.gmra.mxu1 %vm134_vm0, %v706_v56 }
  0x56   :  { %445 = vmatmul.msk.f32.gmra.mxu3 %vm134_vm0, %v757_v7 }
  0x58   :  { %460 = vmatmul.msk.f32.gmra.mxu2 %vm134_vm0, %v757_v7 }
  0x5a   :  { %450 = vmatmul.msk.f32.gmra.mxu0 %vm134_vm0, %v757_v7 }
  0x5b   :  { %455 = vmatmul.msk.f32.gmra.mxu1 %vm134_vm0, %v757_v7 }
  0x5e   :  { %446 = vmatmul.msk.f32.gmra.mxu3 %vm134_vm0, %v808_v22 }
  0x60   :  { %461 = vmatmul.msk.f32.gmra.mxu2 %vm134_vm0, %v808_v22 }
  0x62   :  { %451 = vmatmul.msk.f32.gmra.mxu0 %vm134_vm0, %v808_v22 }
  0x63   :  { %456 = vmatmul.msk.f32.gmra.mxu1 %vm134_vm0, %v808_v22 }
  0x66   :  { %447 = vmatmul.msk.f32.gmra.mxu3 %vm134_vm0, %v842_v32 }
  0x68   :  { %462 = vmatmul.msk.f32.gmra.mxu2 %vm134_vm0, %v842_v32 }
  0x6a   :  { %452 = vmatmul.msk.f32.gmra.mxu0 %vm134_vm0, %v842_v32 }
  0x6b   :  { %457 = vmatmul.msk.f32.gmra.mxu1 %vm134_vm0, %v842_v32 }
  0x9c   :  { %v199_v44 = vpop.f32.mrf.mxu1 }
  0x9d   :  { %375 = vst [vmem:[#allocation2 + $0x8] sm:$0xff] %v199_v44 }
  0xa2   :  { %v231_v53 = vpop.f32.mrf.mxu2 }
  0xa3   :  { %376 = vst [vmem:[#allocation2 + $0x10] sm:$0xff] %v231_v53 }
  0xa5   :  { %v167_v54 = vpop.f32.mrf.mxu0 }
  0xa6   :  { %374 = vst [vmem:[#allocation2] sm:$0xff] %v167_v54  ;;  %v202_v55 = vpop.f32.mrf.mxu1 }
  0xa7   :  { %383 = vst [vmem:[#allocation2 + $0x40] sm:$0xff] %v202_v55 }
  0xab   :  { %v234_v56 = vpop.f32.mrf.mxu2 }
  0xac   :  { %384 = vst [vmem:[#allocation2 + $0x48] sm:$0xff] %v234_v56 }
  0xae   :  { %v170_v57 = vpop.f32.mrf.mxu0 }
  0xaf   :  { %382 = vst [vmem:[#allocation2 + $0x38] sm:$0xff] %v170_v57  ;;  %v205_v58 = vpop.f32.mrf.mxu1 }
  0xb0   :  { %390 = vst [vmem:[#allocation2 + $0x78] sm:$0xff] %v205_v58 }
  0xb3   :  { %v237_v59 = vpop.f32.mrf.mxu2 }
  0xb4   :  { %391 = vst [vmem:[#allocation2 + $0x80] sm:$0xff] %v237_v59 }
  0xb6   :  { %v173_v60 = vpop.f32.mrf.mxu0 }
  0xb7   :  { %389 = vst [vmem:[#allocation2 + $0x70] sm:$0xff] %v173_v60  ;;  %v208_v61 = vpop.f32.mrf.mxu1 }
  0xb8   :  { %397 = vst [vmem:[#allocation2 + $0xb0] sm:$0xff] %v208_v61 }
  0xbb   :  { %v240_v62 = vpop.f32.mrf.mxu2 }
  0xbc   :  { %398 = vst [vmem:[#allocation2 + $0xb8] sm:$0xff] %v240_v62 }
  0xbf   :  { %v176_v63 = vpop.f32.mrf.mxu0 }
  0xc0   :  { %396 = vst [vmem:[#allocation2 + $0xa8] sm:$0xff] %v176_v63  ;;  %v179_v0 = vpop.f32.mrf.mxu3  ;;  %v211_v1 = vpop.f32.mrf.mxu1 }
  0xc1   :  { %403 = vst [vmem:[#allocation2 + $0xe0] sm:$0xff] %v179_v0 }
  0xc2   :  { %404 = vst [vmem:[#allocation2 + $0xe8] sm:$0xff] %v211_v1 }
  0xc3   :  { %v243_v2 = vpop.f32.mrf.mxu2 }
  0xc4   :  { %405 = vst [vmem:[#allocation2 + $0xf0] sm:$0xff] %v243_v2 }
  0xc7   :  { %v295_v3 = vpop.f32.mrf.mxu0 }
  0xc8   :  { %378 = vst [vmem:[#allocation2 + $0x20] sm:$0xff] %v295_v3  ;;  %v327_v4 = vpop.f32.mrf.mxu1 }
  0xc9   :  { %v263_v5 = vpop.f32.mrf.mxu3  ;;  %379 = vst [vmem:[#allocation2 + $0x28] sm:$0xff] %v327_v4 }
  0xca   :  { %377 = vst [vmem:[#allocation2 + $0x18] sm:$0xff] %v263_v5 }
  0xcb   :  { %v359_v6 = vpop.f32.mrf.mxu2 }
  0xcc   :  { %381 = vst.msk [vmem:[#allocation2 + $0x30] sm:$0xff] %vm380_vm1, %v359_v6 }
  0xcf   :  { %v298_v7 = vpop.f32.mrf.mxu0 }
  0xd0   :  { %386 = vst [vmem:[#allocation2 + $0x58] sm:$0xff] %v298_v7  ;;  %v330_v8 = vpop.f32.mrf.mxu1 }
  0xd1   :  { %v266_v9 = vpop.f32.mrf.mxu3  ;;  %387 = vst [vmem:[#allocation2 + $0x60] sm:$0xff] %v330_v8 }
  0xd2   :  { %385 = vst [vmem:[#allocation2 + $0x50] sm:$0xff] %v266_v9 }
  0xd3   :  { %v362_v10 = vpop.f32.mrf.mxu2 }
  0xd4   :  { %388 = vst.msk [vmem:[#allocation2 + $0x68] sm:$0xff] %vm380_vm1, %v362_v10 }
  0xd7   :  { %v301_v11 = vpop.f32.mrf.mxu0 }
  0xd8   :  { %393 = vst [vmem:[#allocation2 + $0x90] sm:$0xff] %v301_v11  ;;  %v333_v12 = vpop.f32.mrf.mxu1 }
  0xd9   :  { %v269_v13 = vpop.f32.mrf.mxu3  ;;  %394 = vst [vmem:[#allocation2 + $0x98] sm:$0xff] %v333_v12 }
  0xda   :  { %392 = vst [vmem:[#allocation2 + $0x88] sm:$0xff] %v269_v13 }
  0xdb   :  { %v365_v14 = vpop.f32.mrf.mxu2 }
  0xdc   :  { %395 = vst.msk [vmem:[#allocation2 + $0xa0] sm:$0xff] %vm380_vm1, %v365_v14 }
  0xdf   :  { %v304_v15 = vpop.f32.mrf.mxu0 }
  0xe0   :  { %400 = vst [vmem:[#allocation2 + $0xc8] sm:$0xff] %v304_v15  ;;  %v336_v16 = vpop.f32.mrf.mxu1 }
  0xe1   :  { %v272_v17 = vpop.f32.mrf.mxu3  ;;  %401 = vst [vmem:[#allocation2 + $0xd0] sm:$0xff] %v336_v16 }
  0xe2   :  { %399 = vst [vmem:[#allocation2 + $0xc0] sm:$0xff] %v272_v17 }
  0xe3   :  { %v368_v18 = vpop.f32.mrf.mxu2 }
  0xe4   :  { %402 = vst.msk [vmem:[#allocation2 + $0xd8] sm:$0xff] %vm380_vm1, %v368_v18 }
  0xe7   :  { %v307_v19 = vpop.f32.mrf.mxu0 }
  0xe8   :  { %407 = vst [vmem:[#allocation2 + $0x100] sm:$0xff] %v307_v19  ;;  %v339_v20 = vpop.f32.mrf.mxu1 }
  0xe9   :  { %v275_v21 = vpop.f32.mrf.mxu3  ;;  %408 = vst [vmem:[#allocation2 + $0x108] sm:$0xff] %v339_v20 }
  0xea   :  { %406 = vst [vmem:[#allocation2 + $0xf8] sm:$0xff] %v275_v21 }
  0xeb   :  { %v371_v22 = vpop.f32.mrf.mxu2 }
  0xec   :  { %409 = vst.msk [vmem:[#allocation2 + $0x110] sm:$0xff] %vm380_vm1, %v371_v22 }
  0xed   :  { %422 = dma.vmem_to_hbm [thread:$0]  %s415_s11, 4480, %s417_s13, [#allocation3], %s509_s14, %s509_s14, %s510_s15  }
  0xee   :  { %506 = dma.done.wait [#allocation3], 4480  }
  0xef   :  { %507 = vsyncadd [#allocation3], 4294962816 }
  0xf0   :  { %427 = vsyncpa [#allocation3], 1 }

</bundles_post_ra>
